<compile_context>
chip_gen: v7x
topology: tpu7x:2x2x1
jax: 0.10.0
libtpu: 0.0.40
codegen_flags: <defaults>
</compile_context>

<pallas_src>
import functools

import jax
import jax.numpy as jnp
from jax.experimental import pallas as pl
from jax.experimental.pallas import tpu as pltpu


def _cross_attn_kernel(*refs, has_bias: bool):
    if has_bias:
        x_ref, y_ref, bias_ref, w1_ref, b1_ref, w2_ref, o_ref = refs
    else:
        x_ref, y_ref, w1_ref, b1_ref, w2_ref, o_ref = refs
        bias_ref = None

    BB, S, D = x_ref.shape

    # ws1 + tanh over all BB*S tokens in one GEMM (f32 accumulation on MXU).
    x = x_ref[...].reshape(BB * S, D)
    h = jnp.tanh(
        jnp.dot(x, w1_ref[...], preferred_element_type=jnp.float32)
        + b1_ref[...]                                    # (1, D) f32 broadcast
    )                                                    # (BB*S, D) f32
    h = h.reshape(BB, S, D)

    # ws2 as VPU multiply + lane reduce (ws2.bias is a softmax no-op: dropped).
    s = jnp.sum(h * w2_ref[...], axis=-1)                # (BB, S) f32
    if has_bias:
        s = s + bias_ref[...]                            # additive mask bias

    # softmax over the sequence axis (torch dim=1), numerically stable in f32
    m = jnp.max(s, axis=-1, keepdims=True)
    e = jnp.exp(s - m)
    attn = e / jnp.sum(e, axis=-1, keepdims=True)        # (BB, S) f32

    # weighted sum of outp2 over the sequence
    y = y_ref[...]                                       # (BB, S, D2)
    if S >= 128:
        # long sequences: contract S on the MXU (batched matmul)
        o = jax.lax.dot_general(
            attn.astype(y.dtype), y,
            dimension_numbers=(((1,), (1,)), ((0,), (0,))),
            preferred_element_type=jnp.float32)
    else:
        o = jnp.sum(y.astype(jnp.float32) * attn[..., None], axis=1)
    o_ref[...] = o.astype(o_ref.dtype)                   # (BB, D2)


def _pick_block_b(B, S, D, D2, itemsize):
    """Batch rows per grid step, under a conservative VMEM budget (~8 MiB)."""
    per_b = 2 * S * (D + D2) * itemsize + 2 * D2 * 4     # double-buffered tiles
    cap = max(8, min(32, (8 << 20) // max(per_b, 1)))
    if B <= cap:
        return B                                         # one block == full batch
    bb = (cap // 8) * 8
    while bb >= 8:                                       # keep output block 8-row aligned
        if B % bb == 0:
            return bb
        bb -= 8
    return B                                             # fallback: whole batch per step


def calculate_cross_attention(outp1, outp2, w1, b1, w2, b2=None,
                              feat='enc', ctxt_mask=None, compute_dtype=None):
    """Pallas implementation of CalculateCrossAttention.forward (eval mode).

    outp1: (B, S, D) with D = 2*hidden_dim  -> attention-score source
    outp2: (B, S, D2)                       -> values to pool
    w1: (D, D) PyTorch layout (out, in);  b1: (D,)
    w2: (1, D) PyTorch layout (out, in);  b2: (1,)  [ignored: softmax-invariant]
    compute_dtype: dtype for the MXU operands (e.g. jnp.bfloat16 on v6e/v7x);
                   defaults to outp1.dtype. Accumulation / softmax stay f32.
    Returns: (B, D2) in outp2.dtype.
    """
    del b2  # adds a constant to every score; softmax is shift-invariant.

    B, S, D = outp1.shape
    D2 = outp2.shape[-1]
    out_dtype = outp2.dtype
    cdt = jnp.dtype(compute_dtype) if compute_dtype is not None else jnp.dtype(outp1.dtype)

    x = jnp.asarray(outp1, cdt)
    y = jnp.asarray(outp2, cdt)
    w1t = jnp.asarray(w1, jnp.float32).T.astype(cdt)     # (D, D) for x @ W1^T
    b1r = jnp.asarray(b1, jnp.float32).reshape(1, D)     # f32: elementwise math stays f32
    w2r = jnp.asarray(w2, jnp.float32).reshape(1, D)     # f32 row for VPU mul + reduce

    BB = _pick_block_b(B, S, D, D2, cdt.itemsize)
    grid = (B // BB,)

    in_specs = [
        pl.BlockSpec((BB, S, D), lambda b: (b, 0, 0)),    # outp1 tile
        pl.BlockSpec((BB, S, D2), lambda b: (b, 0, 0)),   # outp2 tile
    ]
    operands = [x, y]

    has_bias = (feat == 'txt')
    if has_bias:
        assert ctxt_mask is not None
        bias = -10000.0 * (jnp.asarray(ctxt_mask) == 0).astype(jnp.float32)  # (B, S)
        in_specs.append(pl.BlockSpec((BB, S), lambda b: (b, 0)))
        operands.append(bias)
    # 'enc' path: no zeros bias array is built or DMA'd.

    in_specs += [
        pl.BlockSpec((D, D), lambda b: (0, 0)),           # W1^T (constant block)
        pl.BlockSpec((1, D), lambda b: (0, 0)),           # b1 row
        pl.BlockSpec((1, D), lambda b: (0, 0)),           # w2 row
    ]
    operands += [w1t, b1r, w2r]

    kernel = functools.partial(_cross_attn_kernel, has_bias=has_bias)

    return pl.pallas_call(
        kernel,
        out_shape=jax.ShapeDtypeStruct((B, D2), out_dtype),
        grid=grid,
        in_specs=in_specs,
        out_specs=pl.BlockSpec((BB, D2), lambda b: (b, 0)),
        compiler_params=pltpu.CompilerParams(
            dimension_semantics=("parallel",)),
    )(*operands)


def _xavier_uniform(key, shape):
    fan_out, fan_in = shape
    bound = (6.0 / (fan_in + fan_out)) ** 0.5
    return jax.random.uniform(key, shape, jnp.float32, -bound, bound)


def _reference(outp1, outp2, w1, b1, w2, b2, feat='enc', ctxt_mask=None):
    h = jnp.tanh(outp1 @ w1.T + b1)
    s = (h @ w2.T + b2)[..., 0]                          # (B, S)
    if feat == 'txt':
        s = s + -10000.0 * (ctxt_mask == 0).astype(jnp.float32)
    a = jax.nn.softmax(s, axis=1)
    return jnp.sum(outp2 * a[..., None], axis=1)


if __name__ == "__main__":
    # Small shapes implied by the module: hidden_dim=16 -> D = 2*hidden = 32
    B, S, H = 2, 8, 16
    D = 2 * H

    key = jax.random.PRNGKey(0)
    k1, k2, k3, k4 = jax.random.split(key, 4)

    outp1 = jax.random.normal(k1, (B, S, D), jnp.float32)
    outp2 = jax.random.normal(k2, (B, S, D), jnp.float32)

    # Deterministic parameter init (xavier_uniform weights, zero biases),
    # matching the module's init_weights(); dropout is identity at eval.
    w1 = _xavier_uniform(k3, (D, D))     # ws1.weight (out, in)
    b1 = jnp.zeros((D,), jnp.float32)    # ws1.bias
    w2 = _xavier_uniform(k4, (1, D))     # ws2.weight (out, in)
    b2 = jnp.zeros((1,), jnp.float32)    # ws2.bias

    # 'enc' path (no mask), f32 compute
    out = calculate_cross_attention(outp1, outp2, w1, b1, w2, b2, feat='enc')
    out = jax.block_until_ready(out)
    ref = _reference(outp1, outp2, w1, b1, w2, b2, feat='enc')
    assert out.shape == (B, D)
    assert jnp.allclose(out, ref, atol=1e-5, rtol=1e-5)

    # 'txt' path (with context mask)
    mask = jnp.array([[1, 1, 1, 1, 0, 0, 0, 0],
                      [1, 1, 1, 1, 1, 1, 1, 0]], jnp.float32)
    out_txt = calculate_cross_attention(outp1, outp2, w1, b1, w2, b2,
                                        feat='txt', ctxt_mask=mask)
    out_txt = jax.block_until_ready(out_txt)
    ref_txt = _reference(outp1, outp2, w1, b1, w2, b2, feat='txt',
                         ctxt_mask=mask)
    assert jnp.allclose(out_txt, ref_txt, atol=1e-5, rtol=1e-5)

    # bf16 MXU-operand path (v6e/v7x optimization), f32 accumulate/softmax.
    out_bf = calculate_cross_attention(outp1, outp2, w1, b1, w2, b2,
                                       feat='enc', compute_dtype=jnp.bfloat16)
    out_bf = jax.block_until_ready(out_bf)
    ref_bf = _reference(outp1.astype(jnp.bfloat16).astype(jnp.float32),
                        outp2.astype(jnp.bfloat16).astype(jnp.float32),
                        w1.astype(jnp.bfloat16).astype(jnp.float32),
                        b1, w2, b2, feat='enc')
    assert out_bf.dtype == jnp.float32
    assert jnp.allclose(out_bf, ref_bf, atol=2e-3, rtol=2e-3)

    print("KERNEL_OK")
</pallas_src>

<mosaic_0001>
module attributes {stable_mosaic.version = 11 : i64} {
  func.func @_cross_attn_kernel(%arg0: i32, %arg1: memref<2x8x32xf32, #tpu.memory_space<vmem>>, %arg2: memref<2x8x32xf32, #tpu.memory_space<vmem>>, %arg3: memref<32x32xf32, #tpu.memory_space<vmem>>, %arg4: memref<1x32xf32, #tpu.memory_space<vmem>>, %arg5: memref<1x32xf32, #tpu.memory_space<vmem>>, %arg6: memref<2x32xf32, #tpu.memory_space<vmem>>) attributes {dimension_semantics = [#tpu.dimension_semantics<parallel>], iteration_bounds = array<i64: 1>, scalar_prefetch = 0 : i64, scratch_operands = 0 : i64, tpu.core_type = #tpu.core_type<tc>, window_params = [{transform_indices = @transform_0, window_bounds = array<i64: 2, 8, 32>}, {transform_indices = @transform_1, window_bounds = array<i64: 2, 8, 32>}, {pipeline_mode = #tpu.pipeline_mode<synchronous>, transform_indices = @transform_2, window_bounds = array<i64: 32, 32>}, {pipeline_mode = #tpu.pipeline_mode<synchronous>, transform_indices = @transform_3, window_bounds = array<i64: 1, 32>}, {pipeline_mode = #tpu.pipeline_mode<synchronous>, transform_indices = @transform_4, window_bounds = array<i64: 1, 32>}, {transform_indices = @transform_5, window_bounds = array<i64: 2, 32>}]} {
    %c0 = arith.constant 0 : index
    %c0_0 = arith.constant 0 : index
    %c0_1 = arith.constant 0 : index
    %0 = vector.load %arg1[%c0, %c0_0, %c0_1] : memref<2x8x32xf32, #tpu.memory_space<vmem>>, vector<2x8x32xf32>
    %1 = vector.shape_cast %0 : vector<2x8x32xf32> to vector<16x32xf32>
    %c0_2 = arith.constant 0 : index
    %c0_3 = arith.constant 0 : index
    %2 = vector.load %arg3[%c0_2, %c0_3] : memref<32x32xf32, #tpu.memory_space<vmem>>, vector<32x32xf32>
    %cst = arith.constant dense<0.000000e+00> : vector<16x32xf32>
    %3 = tpu.matmul %1, %2, %cst {dimension_numbers = #tpu.dot_dimension_numbers<[1], [0], [0], [1], [0, 0, 1, 1], [], []>} : vector<16x32xf32>, vector<32x32xf32>, vector<16x32xf32> -> vector<16x32xf32>
    %c0_4 = arith.constant 0 : index
    %c0_5 = arith.constant 0 : index
    %4 = vector.load %arg4[%c0_4, %c0_5] : memref<1x32xf32, #tpu.memory_space<vmem>>, vector<1x32xf32>
    %5 = vector.broadcast %4 : vector<1x32xf32> to vector<16x32xf32>
    %6 = arith.addf %3, %5 : vector<16x32xf32>
    %7 = math.tanh %6 : vector<16x32xf32>
    %8 = vector.shape_cast %7 : vector<16x32xf32> to vector<2x8x32xf32>
    %c0_6 = arith.constant 0 : index
    %c0_7 = arith.constant 0 : index
    %9 = vector.load %arg5[%c0_6, %c0_7] : memref<1x32xf32, #tpu.memory_space<vmem>>, vector<1x32xf32>
    %10 = vector.shape_cast %9 : vector<1x32xf32> to vector<1x1x32xf32>
    %11 = vector.broadcast %10 : vector<1x1x32xf32> to vector<2x8x32xf32>
    %12 = arith.mulf %8, %11 : vector<2x8x32xf32>
    %cst_8 = arith.constant dense<0.000000e+00> : vector<2x8xf32>
    %13 = vector.multi_reduction <add>, %12, %cst_8 [2] : vector<2x8x32xf32> to vector<2x8xf32>
    %cst_9 = arith.constant dense<0xFF800000> : vector<2xf32>
    %14 = vector.multi_reduction <maximumf>, %13, %cst_9 [1] : vector<2x8xf32> to vector<2xf32>
    %15 = vector.shape_cast %14 : vector<2xf32> to vector<2x1xf32>
    %16 = vector.broadcast %15 : vector<2x1xf32> to vector<2x8xf32>
    %17 = arith.subf %13, %16 : vector<2x8xf32>
    %18 = math.exp %17 : vector<2x8xf32>
    %cst_10 = arith.constant dense<0.000000e+00> : vector<2xf32>
    %19 = vector.multi_reduction <add>, %18, %cst_10 [1] : vector<2x8xf32> to vector<2xf32>
    %20 = vector.shape_cast %19 : vector<2xf32> to vector<2x1xf32>
    %21 = vector.broadcast %20 : vector<2x1xf32> to vector<2x8xf32>
    %22 = arith.divf %18, %21 : vector<2x8xf32>
    %c0_11 = arith.constant 0 : index
    %c0_12 = arith.constant 0 : index
    %c0_13 = arith.constant 0 : index
    %23 = vector.load %arg2[%c0_11, %c0_12, %c0_13] : memref<2x8x32xf32, #tpu.memory_space<vmem>>, vector<2x8x32xf32>
    %24 = vector.shape_cast %22 : vector<2x8xf32> to vector<2x8x1xf32>
    %25 = vector.broadcast %24 : vector<2x8x1xf32> to vector<2x8x32xf32>
    %26 = arith.mulf %23, %25 : vector<2x8x32xf32>
    %cst_14 = arith.constant dense<0.000000e+00> : vector<2x32xf32>
    %27 = vector.multi_reduction <add>, %26, %cst_14 [1] : vector<2x8x32xf32> to vector<2x32xf32>
    %c0_15 = arith.constant 0 : index
    %c0_16 = arith.constant 0 : index
    %28 = vector.load %arg6[%c0_15, %c0_16] : memref<2x32xf32, #tpu.memory_space<vmem>>, vector<2x32xf32>
    tpu.vector_store %arg6[%c0_15, %c0_16], %27 {strides = array<i32>} : memref<2x32xf32, #tpu.memory_space<vmem>>, vector<2x32xf32>,
    return
  }
  func.func @transform_0(%arg0: i32) -> (i32, i32, i32) {
    %c0_i32 = arith.constant 0 : i32
    %c0_i32_0 = arith.constant 0 : i32
    %c0_i32_1 = arith.constant 0 : i32
    return %arg0, %c0_i32, %c0_i32_0 : i32, i32, i32
  }
  func.func @transform_1(%arg0: i32) -> (i32, i32, i32) {
    %c0_i32 = arith.constant 0 : i32
    %c0_i32_0 = arith.constant 0 : i32
    %c0_i32_1 = arith.constant 0 : i32
    return %arg0, %c0_i32, %c0_i32_0 : i32, i32, i32
  }
  func.func @transform_2(%arg0: i32) -> (i32, i32) {
    %c0_i32 = arith.constant 0 : i32
    %c0_i32_0 = arith.constant 0 : i32
    %c0_i32_1 = arith.constant 0 : i32
    return %c0_i32, %c0_i32_0 : i32, i32
  }
  func.func @transform_3(%arg0: i32) -> (i32, i32) {
    %c0_i32 = arith.constant 0 : i32
    %c0_i32_0 = arith.constant 0 : i32
    %c0_i32_1 = arith.constant 0 : i32
    return %c0_i32, %c0_i32_0 : i32, i32
  }
  func.func @transform_4(%arg0: i32) -> (i32, i32) {
    %c0_i32 = arith.constant 0 : i32
    %c0_i32_0 = arith.constant 0 : i32
    %c0_i32_1 = arith.constant 0 : i32
    return %c0_i32, %c0_i32_0 : i32, i32
  }
  func.func @transform_5(%arg0: i32) -> (i32, i32) {
    %c0_i32 = arith.constant 0 : i32
    %c0_i32_0 = arith.constant 0 : i32
    return %arg0, %c0_i32 : i32, i32
  }
}

</mosaic_0001>

<bundles_post_ra>
// kernel: tpu_custom_call.1
= control target key start
LH: loop header
LB: loop body
LE: loop exit
PB: predicated region body
PF: predicated region fallthrough
CT: control target
= control target key end

     0   :  { %10 = vsyncpa [#allocation3], 0  ;;  %s558_s0 = inlined_call_operand.hbm [shape: f32[2,8,32], index: 0, kind: input, shape index: {}]   ;;  %s559_s1 = inlined_call_operand.hbm [shape: f32[2,8,32], index: 1, kind: input, shape index: {}]   ;;  %s560_s2 = inlined_call_operand.hbm [shape: f32[32,32], index: 2, kind: input, shape index: {}]   ;;  %s561_s3 = inlined_call_operand.vmem [shape: f32[1,32], index: 3, kind: input, shape index: {}]   ;;  %s562_s4 = inlined_call_operand.vmem [shape: f32[1,32], index: 4, kind: input, shape index: {}]   ;;  %s563_s5 = inlined_call_operand.hbm [shape: f32[2,32], index: 5, kind: output, shape index: {}]  }
   0x1   :  { %11 = vsyncpa [#allocation6], 0 }
   0x2   :  { %12 = vsyncpa [#allocation4], 0  ;;  %s440_s18 = smov [#allocation5]   ;;  %s441_s20 = smov [#allocation2]  }
   0x3   :  { %s30_s19 = sshll.u32 %s440_s18, 4  ;;  %s18_s21 = sshll.u32 %s441_s20, 4  ;;  %s31_s19 = int_to_ptr.vmem [resolvable:$true] %s30_s19  ;;  %s477_s21 = int_to_ptr.vmem [resolvable:$true] %s18_s21 }
   0x4   :  { %s346_s24 = scalar_lea.hbm %s559_s1, 256 }
   0x5   :  { %p347_p0 = scmp.ne.s32.totalorder %s559_s1, %s346_s24  ;;  %p350_p1 = scmp.lt.u32.totalorder %s346_s24, %s559_s1 }
   0x7   :  { %p352_p2 = pnand %p350_p1, %p347_p0 }
   0x9   :  { %355 = shalt.err (!%p352_p2)
}
   0xa   :  { %s356_s29 = scalar_lea.vmem %s31_s19, 256  ;;  %p361_p4 = scmp.lt.s32.totalorder %s31_s19, %s31_s19 }
   0xb   :  { %p357_p3 = scmp.ne.s32.totalorder %s31_s19, %s356_s29  ;;  %p362_p5 = scmp.lt.s32.totalorder %s356_s29, %s356_s29 }
   0xd   :  { %p363_p6 = por %p362_p5, %p361_p4 }
   0xf   :  { %p364_p7 = pnand %p363_p6, %p357_p3 }
  0x11   :  { %367 = shalt.err (!%p364_p7)
}
  0x12   :  { %s442_s30 = smov 128   ;;  %s443_s6 = smov 8  }
  0x13   :  { %36 = dma.hbm_to_vmem [thread:$0]  %s559_s1, 256, %s31_s19, [#allocation6], %s442_s30, %s442_s30, %s443_s6  }
  0x14   :  { %s368_s11 = scalar_lea.hbm %s558_s0, 256 }
  0x15   :  { %p369_p8 = scmp.ne.s32.totalorder %s558_s0, %s368_s11  ;;  %p372_p9 = scmp.lt.u32.totalorder %s368_s11, %s558_s0 }
  0x17   :  { %p374_p10 = pnand %p372_p9, %p369_p8 }
  0x19   :  { %377 = shalt.err (!%p374_p10)
}
  0x1a   :  { %s378_s16 = scalar_lea.vmem %s477_s21, 256  ;;  %p383_p12 = scmp.lt.s32.totalorder %s477_s21, %s477_s21 }
  0x1b   :  { %p379_p11 = scmp.ne.s32.totalorder %s477_s21, %s378_s16  ;;  %p384_p13 = scmp.lt.s32.totalorder %s378_s16, %s378_s16 }
  0x1d   :  { %p385_p0 = por %p384_p13, %p383_p12 }
  0x1f   :  { %p386_p1 = pnand %p385_p0, %p379_p11 }
  0x21   :  { %389 = shalt.err (!%p386_p1)
}
  0x22   :  { %24 = dma.hbm_to_vmem [thread:$0]  %s558_s0, 256, %s477_s21, [#allocation3], %s442_s30, %s442_s30, %s443_s6  }
  0x23   :  { %s444_s18 = smov [#allocation7]   ;;  %s390_s23 = scalar_lea.hbm %s560_s2, 512 }
  0x24   :  { %s42_s19 = sshll.u32 %s444_s18, 4  ;;  %p391_p2 = scmp.ne.s32.totalorder %s560_s2, %s390_s23  ;;  %s43_s19 = int_to_ptr.vmem [resolvable:$true] %s42_s19 }
  0x25   :  { %p394_p3 = scmp.lt.u32.totalorder %s390_s23, %s560_s2 }
  0x27   :  { %p396_p4 = pnand %p394_p3, %p391_p2 }
  0x29   :  { %399 = shalt.err (!%p396_p4)
}
  0x2a   :  { %s400_s28 = scalar_lea.vmem %s43_s19, 512  ;;  %p405_p6 = scmp.lt.s32.totalorder %s43_s19, %s43_s19 }
  0x2b   :  { %p401_p5 = scmp.ne.s32.totalorder %s43_s19, %s400_s28  ;;  %p406_p7 = scmp.lt.s32.totalorder %s400_s28, %s400_s28 }
  0x2d   :  { %p407_p8 = por %p406_p7, %p405_p6 }
  0x2f   :  { %p408_p9 = pnand %p407_p8, %p401_p5 }
  0x31   :  { %411 = shalt.err (!%p408_p9)
}
  0x32   :  { %48 = dma.hbm_to_vmem [thread:$0]  %s560_s2, 512, %s43_s19, [#allocation6], %s442_s30, %s442_s30, %s443_s6  }
  0x33   :  { %434 = dma.done.wait [#allocation3], 256  }
  0x34   :  { %435 = vsyncadd [#allocation3], 4294967040 }
  0x35   :  { %436 = dma.done.wait [#allocation6], 768  }
  0x36   :  { %437 = vsyncadd [#allocation6], 4294966528  ;;  %vm75_vm0 = vcmask 261120   ;;  %v64_v0 = vld [vmem:[#allocation7] sm:$0xff]  ;;  %v65_v1 = vld [vmem:[#allocation7 + $0x8] sm:$0xff]  ;;  %v176_v20 = vlaneseq  ;;  %vm186_vm1 = vcmask 1041409  }
  0x37   :  { %v66_v2 = vld [vmem:[#allocation7 + $0x10] sm:$0xff]  ;;  %v317_v3 = vpack.c.bf16 %v65_v1, %v64_v0  ;;  %v67_v4 = vld [vmem:[#allocation7 + $0x18] sm:$0xff]  ;;  %v62_v5 = vld [vmem:[#allocation2] sm:$0xff]  ;;  %vm189_vm2 = vcmask 58368   ;;  %v445_v30 = vmov 0   ;;  %vm278_vm3 = vcmask 254976  }
  0x38   :  { %v321_v6 = vpack.c.bf16 %v67_v4, %v66_v2  ;;  %314 = vmatprep.mubr.msk.f32.mxu0 %vm75_vm0, %v62_v5  ;;  %v63_v7 = vld [vmem:[#allocation2 + $0x8] sm:$0xff]  ;;  %v296_v8 = vld [vmem:[%s561_s3] ss:$0 sm:$0xff]  ;;  %v177_v21 = vand.u32 127, %v176_v20  ;;  %v179_v22 = vshrl.u32 %v176_v20, 7  ;;  %333 = vset.pattern.permute.xlu0 %v445_v30  ;;  %v246_v55 = vld [vmem:[#allocation5] sm:$0xff] }
  0x39   :  { %318 = vmatprep.subr.bf16.mxu0 %v317_v3  ;;  %v299_v13 = vld [vmem:[%s562_s4] ss:$0 sm:$0xff]  ;;  %332 = vset.pattern.permute.xlu1 %v445_v30  ;;  %v247_v58 = vld [vmem:[#allocation5 + $0x8] sm:$0xff]  ;;  %s446_s3 = smov [#allocation8]  }
  0x3a   :  { %320 = vmatpush3.bf16.msra.mxu0 %v317_v3  ;;  %v180_v24 = vsub.s32 %v177_v21, %v179_v22  ;;  %v196_v31 = vsub.s32 0, %v179_v22  ;;  %v200_v32 = vsub.s32 1, %v179_v22  ;;  %s286_s4 = sshll.u32 %s446_s3, 4  ;;  %s287_s4 = int_to_ptr.vmem [resolvable:$true] %s286_s4 }
  0x3b   :  { %322 = vmatprep.subr.bf16.mxu0 %v321_v6  ;;  %s412_s7 = scalar_lea.vmem %s287_s4, 32  ;;  %p417_p11 = scmp.lt.s32.totalorder %s287_s4, %s287_s4 }
  0x3c   :  { %p413_p10 = scmp.ne.s32.totalorder %s287_s4, %s412_s7  ;;  %p418_p12 = scmp.lt.s32.totalorder %s412_s7, %s412_s7 }
  0x3e   :  { %324 = vmatpush3.bf16.msra.mxu0 %v321_v6  ;;  %p419_p13 = por %p418_p12, %p417_p11 }
  0x40   :  { %p420_p0 = pnand %p419_p13, %p413_p10 }
  0x41   :  { %315 = vmatmul.mubr.msk.f32.vlgmr.msra.gmra.mrb[0].mxu0 %vm75_vm0, %v63_v7 }
 0x114   :  { %v316_v9 = vpop.f32.mrb[0].mxu0 }
 0x115   :  { %v154_v10 = vadd.f32 %v316_v9, %v296_v8  ;;  %v148_v11 = vpop.f32.mrb[1].mxu0 }
 0x116   :  { %v149_v12 = vadd.f32 %v296_v8, %v148_v11 }
 0x117   :  { %334 = vtanh.f32 %v154_v10 }
 0x118   :  { %336 = vtanh.f32 %v149_v12 }
 0x121   :  { %v335_v14 = vpop.eup %334 }
 0x122   :  { %v337_v15 = vpop.eup %336  ;;  %v167_v18 = vmul.f32 %v335_v14, %v299_v13 }
 0x123   :  { %v166_v16 = vmul.f32 %v337_v15, %v299_v13 }
 0x124   :  { %v171_v19 = vsel %vm75_vm0, %v167_v18, 0.0 }
 0x125   :  { %v168_v17 = vsel %vm75_vm0, %v166_v16, 0.0 }
 0x126   :  { %169 = vadd.xlane.f32.xlu0 %v168_v17 }
 0x12a   :  { %172 = vadd.xlane.f32.xlu0 %v171_v19 }
 0x1b3   :  { %v170_v23 = vpop.xlane.xlu0 %169 }
 0x1b4   :  { %v181_v26 = vrot.slane %v170_v23, %v180_v24 }
 0x1b7   :  { %v173_v25 = vpop.xlane.xlu0 %172 }
 0x1b8   :  { %v185_v27 = vrot.slane %v173_v25, %v180_v24 }
 0x1ba   :  { %v187_v28 = vsel %vm186_vm1, %v185_v27, %v181_v26 }
 0x1bb   :  { %v190_v29 = vsel %vm189_vm2, %v187_v28, -inf }
 0x1bc   :  { %191 = vmax.xlane.f32.xlu1 %v190_v29 }
 0x249   :  { %v192_v33 = vpop.xlane.xlu1 %191 }
 0x24a   :  { %v197_v34 = vrot.slane %v192_v33, %v196_v31  ;;  %v201_v35 = vrot.slane %v192_v33, %v200_v32 }
 0x24c   :  { %v204_v36 = vsub.f32 %v170_v23, %v197_v34  ;;  %v205_v37 = vsub.f32 %v173_v25, %v201_v35 }
 0x24e   :  { %v206_v38 = vmul.f32 1.442695, %v204_v36  ;;  %v208_v39 = vmul.f32 1.442695, %v205_v37 }
 0x250   :  { %338 = vpow2.f32 %v206_v38 }
 0x251   :  { %340 = vpow2.f32 %v208_v39 }
 0x25a   :  { %v339_v40 = vpop.eup %338 }
 0x25b   :  { %v341_v41 = vpop.eup %340  ;;  %213 = vperm.xlu1 %332, %v339_v40  }
 0x25c   :  { %216 = vperm.xlu0 %333, %v341_v41  }
 0x2da   :  { %v214_v42 = vpop.permute.xlu1 %213 }
 0x2db   :  { %v217_v43 = vpop.permute.xlu0 %216  ;;  %v221_v44 = vrot.slane %v214_v42, %v180_v24 }
 0x2dc   :  { %v225_v45 = vrot.slane %v217_v43, %v180_v24 }
 0x2de   :  { %v226_v46 = vsel %vm186_vm1, %v225_v45, %v221_v44 }
 0x2df   :  { %v228_v47 = vsel %vm189_vm2, %v226_v46, 0.0 }
 0x2e0   :  { %229 = vadd.xlane.f32.xlu1 %v228_v47 }
 0x36d   :  { %v230_v48 = vpop.xlane.xlu1 %229 }
 0x36e   :  { %v235_v49 = vrot.slane %v230_v48, %v196_v31  ;;  %v239_v50 = vrot.slane %v230_v48, %v200_v32 }
 0x370   :  { %342 = vrcp.f32 %v235_v49 }
 0x371   :  { %344 = vrcp.f32 %v239_v50 }
 0x37a   :  { %v343_v51 = vpop.eup %342 }
 0x37b   :  { %v243_v52 = vmul.f32 %v343_v51, %v339_v40  ;;  %v345_v53 = vpop.eup %344 }
 0x37c   :  { %v245_v54 = vmul.f32 %v345_v53, %v341_v41 }
 0x37d   :  { %250 = vperm.xlu0 %333, %v243_v52  }
 0x381   :  { %255 = vperm.xlu0 %333, %v245_v54  }
 0x3fc   :  { %v251_v56 = vpop.permute.xlu0 %250 }
 0x3fd   :  { %v258_v57 = vmul.f32 %v251_v56, %v246_v55 }
 0x3ff   :  { %v260_v59 = vsel %vm75_vm0, %v258_v57, 0.0 }
 0x400   :  { %v261_v60 = vrot.slane %v260_v59, 4  ;;  %v256_v61 = vpop.permute.xlu0 %255 }
 0x401   :  { %v259_v62 = vmul.f32 %v256_v61, %v247_v58 }
 0x402   :  { %v262_v63 = vadd.f32 %v261_v60, %v260_v59 }
 0x403   :  { %v267_v0 = vsel %vm75_vm0, %v259_v62, 0.0 }
 0x404   :  { %v263_v1 = vrot.slane %v262_v63, 2  ;;  %v268_v2 = vrot.slane %v267_v0, 4 }
 0x406   :  { %v264_v3 = vadd.f32 %v263_v1, %v262_v63  ;;  %v269_v4 = vadd.f32 %v268_v2, %v267_v0 }
 0x408   :  { %v270_v5 = vrot.slane %v269_v4, 2  ;;  %v265_v6 = vrot.slane %v264_v3, 1 }
 0x40a   :  { %v271_v7 = vadd.f32 %v270_v5, %v269_v4  ;;  %v266_v9 = vadd.f32 %v265_v6, %v264_v3 }
 0x40c   :  { %v272_v8 = vrot.slane %v271_v7, 1 }
 0x40e   :  { %v273_v10 = vadd.f32 %v272_v8, %v271_v7 }
 0x410   :  { %v276_v11 = vsel %vm186_vm1, %v273_v10, %v266_v9 }
 0x411   :  { %279 = vst.msk [vmem:[#allocation8] sm:$0x3] %vm278_vm3, %v276_v11 }
 0x412   :  { %423 = shalt.err (!%p420_p0)
}
 0x413   :  { %s424_s10 = scalar_lea.hbm %s563_s5, 32 }
 0x414   :  { %p425_p1 = scmp.ne.s32.totalorder %s563_s5, %s424_s10  ;;  %p428_p2 = scmp.lt.u32.totalorder %s424_s10, %s563_s5 }
 0x416   :  { %p430_p3 = pnand %p428_p2, %p425_p1 }
 0x418   :  { %433 = shalt.err (!%p430_p3)
}
 0x419   :  { %289 = dma.vmem_to_hbm [thread:$0]  %s287_s4, 32, %s563_s5, [#allocation4]  }
 0x41a   :  { %438 = dma.done.wait [#allocation4], 32  }
 0x41b   :  { %439 = vsyncadd [#allocation4], 4294967264 }
 0x41c   :  { %293 = vsyncpa [#allocation3], 1 }
 0x41d   :  { %294 = vsyncpa [#allocation6], 1 }
 0x41e   :  { %295 = vsyncpa [#allocation4], 1 }

</bundles_post_ra>
